<compile_context>
chip_gen: v5e
topology: v5e:2x2
jax: 0.10.0
libtpu: 0.0.40
codegen_flags: <defaults>
</compile_context>

<pallas_src>
import functools

import jax
import jax.numpy as jnp
from jax.experimental import pallas as pl
from jax.experimental.pallas import tpu as pltpu

_HPAD = 128  # hidden width padded to one full lane group; lane 127 = bias carrier


def _round_up(n, m):
    return ((n + m - 1) // m) * m


def _mlp_kernel(x_ref, w1_ref, b1_ref, w2_ref, o_ref):
    # x_ref:  (TB, IN)       f32   streamed batch tile (cast to bf16 here)
    # w1_ref: (IN, 128)      bf16  resident; column 127 is zero
    # b1_ref: (1, 128)       f32   resident; lanes [HID:127] zero, lane 127 = 1.0
    # w2_ref: (128, 128)     bf16  resident; row 127 holds b2, cols >= OUT zero
    # o_ref:  (TB, OUT)      f32   narrow output block (masked vst, tiny HBM write)
    out = o_ref.shape[-1]
    x = x_ref[...].astype(jnp.bfloat16)
    h = jnp.dot(x, w1_ref[...], preferred_element_type=jnp.float32)
    h = jnp.maximum(h + b1_ref[...], 0.0)        # ReLU(x @ W1 + b1); lane 127 -> 1.0
    y = jnp.dot(h.astype(jnp.bfloat16), w2_ref[...],
                preferred_element_type=jnp.float32)  # includes b2 via the 1.0 lane
    o_ref[...] = y[:, :out]


@functools.partial(jax.jit, static_argnames=("tb",))
def dqfd_forward(x, w1, b1, w2, b2, *, tb=8192):
    """Forward pass of DQfDNetwork.

    x: (B, in) f32; w1: (in, hid); b1: (1, hid); w2: (hid, out); b2: (1, out).
    Weights are stored pre-transposed ((in, out) layout) so the kernel
    computes x @ W + b, equivalent to PyTorch's x @ W.T + b.
    """
    B, IN = x.shape
    HID = w1.shape[1]
    OUT = w2.shape[1]
    assert HID <= _HPAD - 1, "lane 127 is reserved as the bias-carrier lane"
    assert OUT <= _HPAD

    # Batch tile: multiple of 8 sublanes; clamp for small batches. 8192 keeps
    # double-buffered (lane-padded) x/out blocks + kernel temporaries well
    # under the 48 MiB VMEM budget on every generation.
    tb = _round_up(max(8, min(tb, _round_up(B, 8))), 8)

    # Resident operands (~100 KiB total, constant index_maps -> stay in VMEM).
    w1_p = (jnp.zeros((IN, _HPAD), jnp.bfloat16)
            .at[:, :HID].set(w1.astype(jnp.bfloat16)))
    b1_p = (jnp.zeros((1, _HPAD), jnp.float32)
            .at[:, :HID].set(b1.astype(jnp.float32))
            .at[:, _HPAD - 1].set(1.0))                       # constant-1 carrier
    w2_p = (jnp.zeros((_HPAD, _HPAD), jnp.bfloat16)
            .at[:HID, :OUT].set(w2.astype(jnp.bfloat16))
            .at[_HPAD - 1, :OUT].set(b2[0].astype(jnp.bfloat16)))  # folded b2

    return pl.pallas_call(
        _mlp_kernel,
        out_shape=jax.ShapeDtypeStruct((B, OUT), jnp.float32),
        grid=(pl.cdiv(B, tb),),
        in_specs=[
            pl.BlockSpec((tb, IN), lambda i: (i, 0)),          # streamed f32 x
            pl.BlockSpec((IN, _HPAD), lambda i: (0, 0)),       # resident
            pl.BlockSpec((1, _HPAD), lambda i: (0, 0)),        # resident
            pl.BlockSpec((_HPAD, _HPAD), lambda i: (0, 0)),    # resident
        ],
        out_specs=pl.BlockSpec((tb, OUT), lambda i: (i, 0)),   # narrow output
        compiler_params=pltpu.CompilerParams(
            dimension_semantics=("parallel",),                 # megacore on v7x
            vmem_limit_bytes=48 * 1024 * 1024,                 # headroom on v7x
        ),
    )(x, w1_p, b1_p, w2_p)


def init_params(key, in_size=4, hidden_size=32, out_size=2):
    """Deterministic init mimicking PyTorch nn.Linear default
    (uniform(-1/sqrt(fan_in), 1/sqrt(fan_in)))."""
    k1, k2, k3, k4 = jax.random.split(key, 4)
    bound1 = 1.0 / jnp.sqrt(in_size)
    bound2 = 1.0 / jnp.sqrt(hidden_size)
    # Stored pre-transposed: (in, out) so the kernel does x @ W.
    w1 = jax.random.uniform(k1, (in_size, hidden_size), jnp.float32,
                            -bound1, bound1)
    b1 = jax.random.uniform(k2, (1, hidden_size), jnp.float32,
                            -bound1, bound1)
    w2 = jax.random.uniform(k3, (hidden_size, out_size), jnp.float32,
                            -bound2, bound2)
    b2 = jax.random.uniform(k4, (1, out_size), jnp.float32,
                            -bound2, bound2)
    return w1, b1, w2, b2


def _bf16_reference(x, w1, b1, w2, b2):
    """Pure-JAX reference matching the kernel's bf16-input / f32-accumulate
    numerics (b2 is applied at bf16 precision because it is folded into W2)."""
    f32 = jnp.float32
    xb = x.astype(jnp.bfloat16).astype(f32)
    w1b = w1.astype(jnp.bfloat16).astype(f32)
    w2b = w2.astype(jnp.bfloat16).astype(f32)
    b2b = b2.astype(jnp.bfloat16).astype(f32)
    h = jnp.maximum(xb @ w1b + b1, 0.0)
    return h.astype(jnp.bfloat16).astype(f32) @ w2b + b2b


if __name__ == "__main__":
    key = jax.random.PRNGKey(0)
    kx, kx2, kp = jax.random.split(key, 3)

    IN, HID, OUT = 4, 32, 2
    w1, b1, w2, b2 = init_params(kp, IN, HID, OUT)

    # Small batch (single block).
    B = 8
    x = jax.random.normal(kx, (B, IN), jnp.float32)
    y = dqfd_forward(x, w1, b1, w2, b2)
    jax.block_until_ready(y)
    assert y.shape == (B, OUT)
    assert jnp.allclose(y, _bf16_reference(x, w1, b1, w2, b2),
                        atol=1e-3, rtol=1e-3)
    # Loose check against the pure-f32 PyTorch-equivalent forward.
    y_f32 = jnp.maximum(x @ w1 + b1, 0.0) @ w2 + b2
    assert jnp.allclose(y, y_f32, atol=5e-2, rtol=5e-2)

    # Larger, non-multiple batch: exercises multi-step pipelining and the
    # ragged last block (partial reads / clipped writes).
    B2 = 1000
    x2 = jax.random.normal(kx2, (B2, IN), jnp.float32)
    y2 = dqfd_forward(x2, w1, b1, w2, b2, tb=256)
    jax.block_until_ready(y2)
    assert y2.shape == (B2, OUT)
    assert jnp.allclose(y2, _bf16_reference(x2, w1, b1, w2, b2),
                        atol=1e-3, rtol=1e-3)

    print("KERNEL_OK")
</pallas_src>

<mosaic_0001>
module attributes {stable_mosaic.version = 11 : i64} {
  func.func @_mlp_kernel(%arg0: i32, %arg1: memref<8x4xf32, #tpu.memory_space<vmem>>, %arg2: memref<4x128xbf16, #tpu.memory_space<vmem>>, %arg3: memref<1x128xf32, #tpu.memory_space<vmem>>, %arg4: memref<128x128xbf16, #tpu.memory_space<vmem>>, %arg5: memref<8x2xf32, #tpu.memory_space<vmem>>) attributes {dimension_semantics = [#tpu.dimension_semantics<parallel>], iteration_bounds = array<i64: 1>, scalar_prefetch = 0 : i64, scratch_operands = 0 : i64, tpu.core_type = #tpu.core_type<tc>, window_params = [{transform_indices = @transform_0, window_bounds = array<i64: 8, 4>}, {pipeline_mode = #tpu.pipeline_mode<synchronous>, transform_indices = @transform_1, window_bounds = array<i64: 4, 128>}, {pipeline_mode = #tpu.pipeline_mode<synchronous>, transform_indices = @transform_2, window_bounds = array<i64: 1, 128>}, {pipeline_mode = #tpu.pipeline_mode<synchronous>, transform_indices = @transform_3, window_bounds = array<i64: 128, 128>}, {transform_indices = @transform_4, window_bounds = array<i64: 8, 2>}]} {
    %c0 = arith.constant 0 : index
    %c0_0 = arith.constant 0 : index
    %0 = vector.load %arg1[%c0, %c0_0] : memref<8x4xf32, #tpu.memory_space<vmem>>, vector<8x4xf32>
    %1 = arith.truncf %0 : vector<8x4xf32> to vector<8x4xbf16>
    %c0_1 = arith.constant 0 : index
    %c0_2 = arith.constant 0 : index
    %2 = vector.load %arg2[%c0_1, %c0_2] : memref<4x128xbf16, #tpu.memory_space<vmem>>, vector<4x128xbf16>
    %cst = arith.constant dense<0.000000e+00> : vector<8x128xf32>
    %3 = tpu.matmul %1, %2, %cst {dimension_numbers = #tpu.dot_dimension_numbers<[1], [0], [0], [1], [0, 0, 1, 1], [], []>} : vector<8x4xbf16>, vector<4x128xbf16>, vector<8x128xf32> -> vector<8x128xf32>
    %c0_3 = arith.constant 0 : index
    %c0_4 = arith.constant 0 : index
    %4 = vector.load %arg3[%c0_3, %c0_4] : memref<1x128xf32, #tpu.memory_space<vmem>>, vector<1x128xf32>
    %5 = vector.broadcast %4 : vector<1x128xf32> to vector<8x128xf32>
    %6 = arith.addf %3, %5 : vector<8x128xf32>
    %cst_5 = arith.constant 0.000000e+00 : f32
    %7 = vector.broadcast %cst_5 : f32 to vector<8x128xf32>
    %8 = arith.maximumf %6, %7 : vector<8x128xf32>
    %9 = arith.truncf %8 : vector<8x128xf32> to vector<8x128xbf16>
    %c0_6 = arith.constant 0 : index
    %c0_7 = arith.constant 0 : index
    %10 = vector.load %arg4[%c0_6, %c0_7] : memref<128x128xbf16, #tpu.memory_space<vmem>>, vector<128x128xbf16>
    %cst_8 = arith.constant dense<0.000000e+00> : vector<8x128xf32>
    %11 = tpu.matmul %9, %10, %cst_8 {dimension_numbers = #tpu.dot_dimension_numbers<[1], [0], [0], [1], [0, 0, 1, 1], [], []>} : vector<8x128xbf16>, vector<128x128xbf16>, vector<8x128xf32> -> vector<8x128xf32>
    %12 = vector.extract_strided_slice %11 {offsets = [0, 0], sizes = [8, 2], strides = [1, 1]} : vector<8x128xf32> to vector<8x2xf32>
    %c0_9 = arith.constant 0 : index
    %c0_10 = arith.constant 0 : index
    %13 = vector.load %arg5[%c0_9, %c0_10] : memref<8x2xf32, #tpu.memory_space<vmem>>, vector<8x2xf32>
    tpu.vector_store %arg5[%c0_9, %c0_10], %12 {strides = array<i32>} : memref<8x2xf32, #tpu.memory_space<vmem>>, vector<8x2xf32>,
    return
  }
  func.func @transform_0(%arg0: i32) -> (i32, i32) {
    %c0_i32 = arith.constant 0 : i32
    %c0_i32_0 = arith.constant 0 : i32
    return %arg0, %c0_i32 : i32, i32
  }
  func.func @transform_1(%arg0: i32) -> (i32, i32) {
    %c0_i32 = arith.constant 0 : i32
    %c0_i32_0 = arith.constant 0 : i32
    %c0_i32_1 = arith.constant 0 : i32
    return %c0_i32, %c0_i32_0 : i32, i32
  }
  func.func @transform_2(%arg0: i32) -> (i32, i32) {
    %c0_i32 = arith.constant 0 : i32
    %c0_i32_0 = arith.constant 0 : i32
    %c0_i32_1 = arith.constant 0 : i32
    return %c0_i32, %c0_i32_0 : i32, i32
  }
  func.func @transform_3(%arg0: i32) -> (i32, i32) {
    %c0_i32 = arith.constant 0 : i32
    %c0_i32_0 = arith.constant 0 : i32
    %c0_i32_1 = arith.constant 0 : i32
    return %c0_i32, %c0_i32_0 : i32, i32
  }
  func.func @transform_4(%arg0: i32) -> (i32, i32) {
    %c0_i32 = arith.constant 0 : i32
    %c0_i32_0 = arith.constant 0 : i32
    return %arg0, %c0_i32 : i32, i32
  }
}

</mosaic_0001>

<bundles_post_ra>
// kernel: dqfd_forward.1
= control target key start
LH: loop header
LB: loop body
LE: loop exit
PB: predicated region body
PF: predicated region fallthrough
CT: control target
= control target key end

     0   :  { %vm29_vm0 = vcmask 1041408   ;;  %vm25_vm1 = vcmask 31744   ;;  %vm125_vm2 = vcmask 15360   ;;  %s234_s1 = inlined_call_operand.vmem [shape: bf16[4,128], index: 1, kind: input, shape index: {}]   ;;  %s235_s0 = inlined_call_operand.vmem [shape: f32[8,4], index: 0, kind: input, shape index: {}]   ;;  %s236_s3 = inlined_call_operand.vmem [shape: bf16[128,128], index: 3, kind: input, shape index: {}]   ;;  %s237_s2 = inlined_call_operand.vmem [shape: f32[1,128], index: 2, kind: input, shape index: {}]   ;;  %s238_s4 = inlined_call_operand.vmem [shape: f32[8,2], index: 4, kind: output, shape index: {}]  }
   0x1   :  { %v20_v0 = vld [vmem:[%s234_s1] sm:$0x3]  ;;  %v171_v2 = vld [vmem:[%s236_s3 + $0x38] sm:$0xff]  ;;  %v170_v5 = vld [vmem:[%s236_s3 + $0x30] sm:$0xff] }
   0x2   :  { %v18_v1 = vld [vmem:[%s235_s0] sm:$0xff]  ;;  %v31_v3 = vsel %vm29_vm0, %v20_v0, 0  ;;  %112 = vmatpush.bf16.msra.mxu1 %v171_v2  ;;  %v169_v6 = vld [vmem:[%s236_s3 + $0x28] sm:$0xff]  ;;  %v167_v8 = vld [vmem:[%s236_s3 + $0x18] sm:$0xff] }
   0x3   :  { %v19_v4 = vpack.c.bf16 %v18_v1, %v18_v1  ;;  %40 = vmatpush.bf16.msra.mxu0 %v31_v3  ;;  %v168_v7 = vld [vmem:[%s236_s3 + $0x20] sm:$0xff]  ;;  %v166_v9 = vld [vmem:[%s236_s3 + $0x10] sm:$0xff]  ;;  %v165_v10 = vld [vmem:[%s236_s3 + $0x8] sm:$0xff] }
   0x4   :  { %v164_v11 = vld [vmem:[%s236_s3] sm:$0xff] }
   0x5   :  { %v172_v12 = vld [vmem:[%s237_s2] ss:$0 sm:$0xff] }
   0x6   :  { %131 = vmatmul.msk.bf16.vlgmr.msra.gmra.mxu0 %vm25_vm1, %v19_v4  ;;  %113 = vmatpush.bf16.msra.mxu1 %v170_v5 }
   0xa   :  { %114 = vmatpush.bf16.msra.mxu1 %v169_v6 }
   0xe   :  { %115 = vmatpush.bf16.msra.mxu1 %v168_v7 }
  0x12   :  { %116 = vmatpush.bf16.msra.mxu1 %v167_v8 }
  0x16   :  { %117 = vmatpush.bf16.msra.mxu1 %v166_v9 }
  0x1a   :  { %118 = vmatpush.bf16.msra.mxu1 %v165_v10 }
  0x1e   :  { %119 = vmatpush.bf16.msra.mxu1 %v164_v11 }
  0x83   :  { %v42_v13 = vpop.f32.mrf.mxu0 }
  0x84   :  { %v43_v14 = vadd.f32 %v172_v12, %v42_v13 }
  0x86   :  { %v46_v15 = vmax.f32 %v43_v14, 0.0 }
  0x88   :  { %v47_v16 = vpack.c.bf16 %v46_v15, %v46_v15 }
  0x8a   :  { %120 = vmatmul.bf16.vlgmr.msra.gmra.mxu1 %v47_v16 }
  0x8b   :  { %v44_v17 = vpop.f32.mrf.mxu0 }
 0x107   :  { %v121_v18 = vpop.f32.mrf.mxu1 }
 0x108   :  { %126 = vst.msk [vmem:[%s238_s4] sm:$0xff] %vm125_vm2, %v121_v18 }
 0x10f   :  { %v123_v19 = vpop.f32.mrf.mxu1 }

</bundles_post_ra>
